<compile_context>
chip_gen: v7x
topology: tpu7x:2x2x1
jax: 0.10.0
libtpu: 0.0.40
codegen_flags: <defaults>
</compile_context>

<pallas_src>
import functools

import jax
import jax.numpy as jnp
import numpy as np
from jax.experimental import pallas as pl
from jax.experimental.pallas import tpu as pltpu


# ---------------------------------------------------------------------------
# VMEM budget / tiling plan
# ---------------------------------------------------------------------------
def _round_up(x, m):
    return -(-x // m) * m


def _vmem_budget():
    """(input_stream_budget_bytes, vmem_limit_bytes) for this TPU generation."""
    try:
        vmem = int(pltpu.get_tpu_info().vmem_capacity_bytes)
    except Exception:  # no info available -> conservative (v7x-like) default
        vmem = 64 * 1024 * 1024
    budget = max(8 * 1024 * 1024, min(48 * 1024 * 1024, vmem // 2))
    limit = min(int(vmem * 0.9), budget + 16 * 1024 * 1024)
    return budget, limit


def _plan_tiles(B, S, H, itemsize, n_streams, with_mask, budget):
    """Pick (TB, TS).

    The Pallas pipeline double-buffers every input, so the streamed working
    set per grid step is 2 * n_streams * TB * TS * H * itemsize bytes, plus
    (for 'aver') the lane-padded (TB, TS, 1) f32 mask block which occupies
    TB * TS * 128 * 4 bytes per buffer.  TB is either the whole batch or a
    multiple of 8 so the (TB, H) output store stays unmasked; TS is either the
    whole sequence or a multiple of 8 (ragged tail handled in-kernel).
    """
    row_bytes = 2 * n_streams * H * itemsize          # per (batch row, token)
    if with_mask:
        row_bytes += 2 * 128 * 4                      # lane-padded f32 mask

    if B * S * row_bytes <= budget:
        # Everything fits in one block.  Still split the batch into >= 2
        # 8-aligned 'parallel' steps when possible so both v7x TensorCores
        # get work; otherwise a single full-batch block.
        if B > 8:
            tb = _round_up(-(-B // 2), 8)
            tb = max(8, min(tb, (B // 8) * 8))
            return tb, S
        return B, S

    tokens_budget = budget // row_bytes               # (row, token) pairs
    if B >= 8:
        tb_fit = (tokens_budget // S) // 8 * 8
        if tb_fit >= 8:                               # full sequence fits
            return min(tb_fit, (B // 8) * 8), S
        tb = 8
    else:
        tb = B

    # Sequence must be tiled too: largest multiple-of-8 TS that fits.
    ts_fit = (tokens_budget // max(tb, 1)) // 8 * 8
    if ts_fit >= S or S <= 8:
        ts = S
    else:
        ts = max(8, ts_fit)
    return tb, ts


# ---------------------------------------------------------------------------
# Kernels
# ---------------------------------------------------------------------------
def _seq_pool_kernel(*refs, pooling, combine, inv_s, seq_len, block_s,
                     multi_step, seq_ragged):
    """Pooling over the sequence axis.

    multi_step=False : one full-sequence block per batch tile; writes o_ref
                       directly (no scratch, no init/finalize).
    multi_step=True  : S streamed through an f32 (TB, H) accumulator; the
                       ragged sequence tail (if any) is masked in-kernel.
    """
    if multi_step:
        *ins, o_ref, acc_ref = refs
    else:
        *ins, o_ref = refs
        acc_ref = None

    pos = 0
    xi_ref = ins[pos]
    pos += 1
    xj_ref = None
    if combine:
        xj_ref = ins[pos]
        pos += 1
    mask_ref = invden_ref = None
    if pooling == "aver":
        mask_ref = ins[pos]
        invden_ref = ins[pos + 1]

    x = xi_ref[...].astype(jnp.float32)               # (TB, TS, H)
    if combine:
        x = x + xj_ref[...].astype(jnp.float32)

    valid = None
    if seq_ragged:
        s_idx = pl.program_id(1)
        tok = jax.lax.broadcasted_iota(jnp.int32, (1, block_s, 1), 1)
        valid = tok < (seq_len - s_idx * block_s)     # (1, TS, 1)

    if pooling == "max":
        # NOTE: attention_mask intentionally ignored, matching the module.
        if valid is not None:
            x = jnp.where(valid, x, -jnp.inf)
        part = jnp.max(x, axis=1)                     # (TB, H)
    elif pooling == "aver":
        xm = x * mask_ref[...].astype(jnp.float32)
        if valid is not None:
            xm = jnp.where(valid, xm, 0.0)            # also kills padded-tail garbage
        part = jnp.sum(xm, axis=1)
    else:  # 'aver_all'
        if valid is not None:
            x = jnp.where(valid, x, 0.0)
        part = jnp.sum(x, axis=1)

    def _finalize(acc):
        if pooling == "aver":
            acc = acc * invden_ref[...]               # (TB,1) broadcast over H
        elif pooling == "aver_all":
            acc = acc * inv_s
        return acc.astype(o_ref.dtype)

    if not multi_step:
        o_ref[...] = _finalize(part)
        return

    s_idx = pl.program_id(1)
    if pooling == "max":
        @pl.when(s_idx == 0)
        def _init():
            acc_ref[...] = jnp.full(acc_ref.shape, -jnp.inf, acc_ref.dtype)
        acc_ref[...] = jnp.maximum(acc_ref[...], part)
    else:
        @pl.when(s_idx == 0)
        def _init():
            acc_ref[...] = jnp.zeros_like(acc_ref)
        acc_ref[...] += part

    @pl.when(s_idx == pl.num_programs(1) - 1)
    def _fin():
        o_ref[...] = _finalize(acc_ref[...])


def _cls_kernel(*refs, combine):
    """Token-0 add/copy.  Inputs are (TB, min(S,8), H) blocks straight out of
    the original 3-D arrays (DMA granularity is the (8,128) tile anyway)."""
    o_ref = refs[-1]
    x = refs[0][:, 0, :].astype(jnp.float32)
    if combine:
        x = x + refs[1][:, 0, :].astype(jnp.float32)
    o_ref[...] = x.astype(o_ref.dtype)


# ---------------------------------------------------------------------------
# Forward wrapper (mirrors Layer2Pooling.forward)
# ---------------------------------------------------------------------------
def layer2_pooling_forward(features, pooling, word_embedding_dimension,
                           layer_i=0, layer_j=-1, _tile_override=None):
    """JAX/Pallas equivalent of Layer2Pooling.forward.

    `features`: dict with 'all_layer_embeddings' (list of [B,S,H]),
    'attention_mask' ([B,S]), 'cls_token_embeddings' ([B,H]).
    Returns the dict with 'sentence_embedding' added.
    `_tile_override=(TB, TS)` is a testing hook for the seq-pooling path.
    """
    all_layers = features["all_layer_embeddings"]
    xi = all_layers[layer_i]
    xj = all_layers[layer_j]
    # Raw index comparison, exactly like the PyTorch module.
    combine = (layer_i != layer_j)

    if pooling not in ("cls", "aver", "max", "aver_all"):
        # 'else' branch of the module: passthrough, no kernel needed.
        features.update({"sentence_embedding": features["cls_token_embeddings"]})
        return features

    B, S, H = xi.shape
    assert H == word_embedding_dimension
    out_dtype = xi.dtype
    itemsize = xi.dtype.itemsize
    n_streams = 2 if combine else 1          # xj is never DMA'd when not combining
    budget, vmem_limit = _vmem_budget()

    if pooling == "cls":
        # Only token 0 is needed; reading min(S, 8) tokens costs the same HBM
        # traffic as 1 token because of the (8, 128) tile granularity, and
        # avoids any XLA slice / intermediate.
        ts0 = min(S, 8)
        TB, _ = _plan_tiles(B, ts0, H, itemsize, n_streams, False, budget)
        ops = [xi] + ([xj] if combine else [])
        in_spec = pl.BlockSpec((TB, ts0, H), lambda b: (b, 0, 0))
        out = pl.pallas_call(
            functools.partial(_cls_kernel, combine=combine),
            out_shape=jax.ShapeDtypeStruct((B, H), out_dtype),
            grid=(pl.cdiv(B, TB),),
            in_specs=[in_spec] * len(ops),
            out_specs=pl.BlockSpec((TB, H), lambda b: (b, 0)),
            compiler_params=pltpu.CompilerParams(
                dimension_semantics=("parallel",),
                vmem_limit_bytes=vmem_limit),
        )(*ops)
    else:
        with_mask = (pooling == "aver")
        if _tile_override is not None:
            TB, TS = _tile_override
        else:
            TB, TS = _plan_tiles(B, S, H, itemsize, n_streams, with_mask, budget)
        ns = pl.cdiv(S, TS)
        multi_step = ns > 1
        seq_ragged = (S % TS) != 0

        ops = [xi] + ([xj] if combine else [])
        if with_mask:
            # Keep the mask in f32 and precompute the reciprocal denominator
            # once in the wrapper; the kernel only does one VPU multiply.
            mask_f32 = features["attention_mask"].astype(jnp.float32)
            mask3 = mask_f32.reshape(B, S, 1)
            inv_den = 1.0 / (jnp.sum(mask_f32, axis=1, keepdims=True) + 0.01)
            ops += [mask3, inv_den]

        if multi_step:
            emb_spec = pl.BlockSpec((TB, TS, H), lambda b, s: (b, s, 0))
            mask_spec = pl.BlockSpec((TB, TS, 1), lambda b, s: (b, s, 0))
            den_spec = pl.BlockSpec((TB, 1), lambda b, s: (b, 0))
            out_spec = pl.BlockSpec((TB, H), lambda b, s: (b, 0))
            grid = (pl.cdiv(B, TB), ns)                # reduction axis last
            dims = ("parallel", "arbitrary")
            scratch = [pltpu.VMEM((TB, H), jnp.float32)]
        else:
            emb_spec = pl.BlockSpec((TB, S, H), lambda b: (b, 0, 0))
            mask_spec = pl.BlockSpec((TB, S, 1), lambda b: (b, 0, 0))
            den_spec = pl.BlockSpec((TB, 1), lambda b: (b, 0))
            out_spec = pl.BlockSpec((TB, H), lambda b: (b, 0))
            grid = (pl.cdiv(B, TB),)
            dims = ("parallel",)
            scratch = []

        specs = [emb_spec] * (2 if combine else 1)
        if with_mask:
            specs += [mask_spec, den_spec]

        kernel = functools.partial(
            _seq_pool_kernel, pooling=pooling, combine=combine,
            inv_s=1.0 / float(S), seq_len=S, block_s=TS,
            multi_step=multi_step, seq_ragged=seq_ragged)
        out = pl.pallas_call(
            kernel,
            out_shape=jax.ShapeDtypeStruct((B, H), out_dtype),
            grid=grid,
            in_specs=specs,
            out_specs=out_spec,
            scratch_shapes=scratch,
            compiler_params=pltpu.CompilerParams(
                dimension_semantics=dims,
                vmem_limit_bytes=vmem_limit),
        )(*ops)

    features.update({"sentence_embedding": out})
    return features


# ---------------------------------------------------------------------------
# Reference + test
# ---------------------------------------------------------------------------
def _reference(xi, xj, mask, pooling, combine):
    x = xi + xj if combine else xi
    if pooling == "cls":
        return x[:, 0, :]
    if pooling == "aver":
        xm = x * mask[:, :, None]
        return xm.sum(axis=1) / (mask.sum(axis=1, keepdims=True) + 0.01)
    if pooling == "max":
        return x.max(axis=1)
    if pooling == "aver_all":
        return x.mean(axis=1)
    raise ValueError(pooling)


if __name__ == "__main__":
    key = jax.random.PRNGKey(0)

    def run_suite(B, S, H, num_layers, layer_i, layer_j, tile_override=None):
        ks = jax.random.split(key, num_layers + 2)
        layers = [jax.random.normal(ks[k], (B, S, H), dtype=jnp.float32)
                  for k in range(num_layers)]
        lens = (jnp.arange(B) % S) + 1                         # varied lengths
        mask = (jnp.arange(S)[None, :] < lens[:, None]).astype(jnp.float32)
        cls_tok = jax.random.normal(ks[-1], (B, H), dtype=jnp.float32)
        feats_base = {"all_layer_embeddings": layers,
                      "attention_mask": mask,
                      "cls_token_embeddings": cls_tok}
        xi, xj = layers[layer_i], layers[layer_j]
        combine = layer_i != layer_j
        for mode in ("cls", "aver", "max", "aver_all"):
            feats = dict(feats_base)
            feats = layer2_pooling_forward(
                feats, mode, H, layer_i=layer_i, layer_j=layer_j,
                _tile_override=tile_override)
            got = jax.block_until_ready(feats["sentence_embedding"])
            want = _reference(xi, xj, mask, mode, combine)
            np.testing.assert_allclose(np.asarray(got), np.asarray(want),
                                       rtol=1e-5, atol=1e-5)
            assert got.shape == (B, H)

    # Small shapes: two layers combined, then a single layer (xj never DMA'd).
    run_suite(2, 8, 32, 3, 0, -1)
    run_suite(2, 8, 32, 3, 0, 0)
    # Ragged batch (B % 8 != 0): cdiv edge block, no input padding anywhere.
    run_suite(10, 24, 32, 2, 0, -1)
    # Forced multi-step sequence streaming with a ragged sequence tail
    # (exercises the accumulator + in-kernel tail masking paths).
    run_suite(10, 24, 32, 2, 0, -1, tile_override=(8, 16))

    # Fallback 'else' branch: passthrough of cls_token_embeddings.
    B, S, H = 2, 8, 32
    ks = jax.random.split(key, 3)
    feats = {
        "all_layer_embeddings": [jax.random.normal(ks[0], (B, S, H), jnp.float32),
                                 jax.random.normal(ks[1], (B, S, H), jnp.float32)],
        "attention_mask": jnp.ones((B, S), jnp.float32),
        "cls_token_embeddings": jax.random.normal(ks[2], (B, H), jnp.float32),
    }
    out = layer2_pooling_forward(dict(feats), "unknown_mode", H)
    got = jax.block_until_ready(out["sentence_embedding"])
    np.testing.assert_allclose(np.asarray(got),
                               np.asarray(feats["cls_token_embeddings"]))

    print("KERNEL_OK")
</pallas_src>

<mosaic_0001>
module attributes {stable_mosaic.version = 11 : i64} {
  func.func @_cls_kernel(%arg0: i32, %arg1: memref<2x8x32xf32, #tpu.memory_space<vmem>>, %arg2: memref<2x8x32xf32, #tpu.memory_space<vmem>>, %arg3: memref<2x32xf32, #tpu.memory_space<vmem>>) attributes {dimension_semantics = [#tpu.dimension_semantics<parallel>], iteration_bounds = array<i64: 1>, scalar_prefetch = 0 : i64, scratch_operands = 0 : i64, tpu.core_type = #tpu.core_type<tc>, window_params = [{transform_indices = @transform_0, window_bounds = array<i64: 2, 8, 32>}, {transform_indices = @transform_1, window_bounds = array<i64: 2, 8, 32>}, {transform_indices = @transform_2, window_bounds = array<i64: 2, 32>}]} {
    %c0 = arith.constant 0 : index
    %c0_0 = arith.constant 0 : index
    %c0_1 = arith.constant 0 : index
    %0 = vector.load %arg1[%c0, %c0_0, %c0_1] : memref<2x8x32xf32, #tpu.memory_space<vmem>>, vector<2x1x32xf32>
    %1 = vector.shape_cast %0 : vector<2x1x32xf32> to vector<2x32xf32>
    %c0_2 = arith.constant 0 : index
    %c0_3 = arith.constant 0 : index
    %c0_4 = arith.constant 0 : index
    %2 = vector.load %arg2[%c0_2, %c0_3, %c0_4] : memref<2x8x32xf32, #tpu.memory_space<vmem>>, vector<2x1x32xf32>
    %3 = vector.shape_cast %2 : vector<2x1x32xf32> to vector<2x32xf32>
    %4 = arith.addf %1, %3 : vector<2x32xf32>
    %c0_5 = arith.constant 0 : index
    %c0_6 = arith.constant 0 : index
    %5 = vector.load %arg3[%c0_5, %c0_6] : memref<2x32xf32, #tpu.memory_space<vmem>>, vector<2x32xf32>
    tpu.vector_store %arg3[%c0_5, %c0_6], %4 {strides = array<i32>} : memref<2x32xf32, #tpu.memory_space<vmem>>, vector<2x32xf32>,
    return
  }
  func.func @transform_0(%arg0: i32) -> (i32, i32, i32) {
    %c0_i32 = arith.constant 0 : i32
    %c0_i32_0 = arith.constant 0 : i32
    %c0_i32_1 = arith.constant 0 : i32
    return %arg0, %c0_i32, %c0_i32_0 : i32, i32, i32
  }
  func.func @transform_1(%arg0: i32) -> (i32, i32, i32) {
    %c0_i32 = arith.constant 0 : i32
    %c0_i32_0 = arith.constant 0 : i32
    %c0_i32_1 = arith.constant 0 : i32
    return %arg0, %c0_i32, %c0_i32_0 : i32, i32, i32
  }
  func.func @transform_2(%arg0: i32) -> (i32, i32) {
    %c0_i32 = arith.constant 0 : i32
    %c0_i32_0 = arith.constant 0 : i32
    return %arg0, %c0_i32 : i32, i32
  }
}

</mosaic_0001>

<bundles_post_ra>
// kernel: tpu_custom_call.1
= control target key start
LH: loop header
LB: loop body
LE: loop exit
PB: predicated region body
PF: predicated region fallthrough
CT: control target
= control target key end

     0   :  { %7 = vsyncpa [#allocation3], 0  ;;  %s203_s0 = inlined_call_operand.hbm [shape: f32[2,8,32], index: 0, kind: input, shape index: {}]   ;;  %s204_s1 = inlined_call_operand.hbm [shape: f32[2,8,32], index: 1, kind: input, shape index: {}]   ;;  %s205_s2 = inlined_call_operand.hbm [shape: f32[2,32], index: 2, kind: output, shape index: {}]  }
   0x1   :  { %8 = vsyncpa [#allocation6], 0 }
   0x2   :  { %9 = vsyncpa [#allocation4], 0  ;;  %s147_s9 = smov [#allocation2]   ;;  %s75_s13 = scalar_lea.hbm %s203_s0, 256 }
   0x3   :  { %s15_s10 = sshll.u32 %s147_s9, 4  ;;  %p76_p0 = scmp.ne.s32.totalorder %s203_s0, %s75_s13  ;;  %s16_s10 = int_to_ptr.vmem [resolvable:$true] %s15_s10 }
   0x4   :  { %p79_p1 = scmp.lt.u32.totalorder %s75_s13, %s203_s0 }
   0x6   :  { %p81_p2 = pnand %p79_p1, %p76_p0 }
   0x8   :  { %84 = shalt.err (!%p81_p2)
}
   0x9   :  { %s85_s18 = scalar_lea.vmem %s16_s10, 256  ;;  %p90_p4 = scmp.lt.s32.totalorder %s16_s10, %s16_s10 }
   0xa   :  { %p86_p3 = scmp.ne.s32.totalorder %s16_s10, %s85_s18  ;;  %p91_p5 = scmp.lt.s32.totalorder %s85_s18, %s85_s18 }
   0xc   :  { %p92_p6 = por %p91_p5, %p90_p4 }
   0xe   :  { %p93_p7 = pnand %p92_p6, %p86_p3 }
  0x10   :  { %96 = shalt.err (!%p93_p7)
}
  0x11   :  { %s148_s19 = smov 128   ;;  %s149_s20 = smov 8  }
  0x12   :  { %21 = dma.hbm_to_vmem [thread:$0]  %s203_s0, 256, %s16_s10, [#allocation3], %s148_s19, %s148_s19, %s149_s20  }
  0x13   :  { %s150_s23 = smov [#allocation5]   ;;  %s97_s27 = scalar_lea.hbm %s204_s1, 256 }
  0x14   :  { %s27_s24 = sshll.u32 %s150_s23, 4  ;;  %p98_p8 = scmp.ne.s32.totalorder %s204_s1, %s97_s27  ;;  %s28_s24 = int_to_ptr.vmem [resolvable:$true] %s27_s24 }
  0x15   :  { %p101_p9 = scmp.lt.u32.totalorder %s97_s27, %s204_s1 }
  0x17   :  { %p103_p10 = pnand %p101_p9, %p98_p8 }
  0x19   :  { %106 = shalt.err (!%p103_p10)
}
  0x1a   :  { %s107_s4 = scalar_lea.vmem %s28_s24, 256  ;;  %p112_p12 = scmp.lt.s32.totalorder %s28_s24, %s28_s24 }
  0x1b   :  { %p108_p11 = scmp.ne.s32.totalorder %s28_s24, %s107_s4  ;;  %p113_p13 = scmp.lt.s32.totalorder %s107_s4, %s107_s4 }
  0x1d   :  { %p114_p0 = por %p113_p13, %p112_p12 }
  0x1f   :  { %p115_p1 = pnand %p114_p0, %p108_p11 }
  0x21   :  { %118 = shalt.err (!%p115_p1)
}
  0x22   :  { %33 = dma.hbm_to_vmem [thread:$0]  %s204_s1, 256, %s28_s24, [#allocation6], %s148_s19, %s148_s19, %s149_s20  }
  0x23   :  { %141 = dma.done.wait [#allocation3], 256  }
  0x24   :  { %142 = vsyncadd [#allocation3], 4294967040 }
  0x25   :  { %143 = dma.done.wait [#allocation6], 256  }
  0x26   :  { %144 = vsyncadd [#allocation6], 4294967040  ;;  %v40_v0 = vld [vmem:[#allocation2] sm:$0x1]  ;;  %v41_v1 = vld [vmem:[#allocation2 + $0x8] sm:$0x1] }
  0x27   :  { %v42_v2 = vld [vmem:[#allocation5] sm:$0x1]  ;;  %v43_v3 = vld [vmem:[#allocation5 + $0x8] sm:$0x1]  ;;  %s151_s6 = smov [#allocation7]   ;;  %vm49_vm0 = vcmask 1041409  }
  0x28   :  { %v44_v4 = vadd.f32 %v42_v2, %v40_v0  ;;  %v45_v5 = vadd.f32 %v43_v3, %v41_v1  ;;  %s60_s7 = sshll.u32 %s151_s6, 4  ;;  %vm52_vm1 = vcmask 254976   ;;  %s61_s7 = int_to_ptr.vmem [resolvable:$true] %s60_s7 }
  0x29   :  { %s119_s8 = scalar_lea.vmem %s61_s7, 32  ;;  %p124_p3 = scmp.lt.s32.totalorder %s61_s7, %s61_s7 }
  0x2a   :  { %v48_v6 = vrot.slane %v45_v5, 7  ;;  %p120_p2 = scmp.ne.s32.totalorder %s61_s7, %s119_s8  ;;  %p125_p4 = scmp.lt.s32.totalorder %s119_s8, %s119_s8 }
  0x2c   :  { %v50_v7 = vsel %vm49_vm0, %v48_v6, %v44_v4  ;;  %p126_p5 = por %p125_p4, %p124_p3 }
  0x2d   :  { %53 = vst.msk [vmem:[#allocation7] sm:$0x3] %vm52_vm1, %v50_v7 }
  0x2e   :  { %p127_p6 = pnand %p126_p5, %p120_p2 }
  0x30   :  { %130 = shalt.err (!%p127_p6)
}
  0x31   :  { %s131_s10 = scalar_lea.hbm %s205_s2, 32 }
  0x32   :  { %p132_p7 = scmp.ne.s32.totalorder %s205_s2, %s131_s10  ;;  %p135_p8 = scmp.lt.u32.totalorder %s131_s10, %s205_s2 }
  0x34   :  { %p137_p9 = pnand %p135_p8, %p132_p7 }
  0x36   :  { %140 = shalt.err (!%p137_p9)
}
  0x37   :  { %63 = dma.vmem_to_hbm [thread:$0]  %s61_s7, 32, %s205_s2, [#allocation4]  }
  0x38   :  { %145 = dma.done.wait [#allocation4], 32  }
  0x39   :  { %146 = vsyncadd [#allocation4], 4294967264 }
  0x3a   :  { %67 = vsyncpa [#allocation3], 1 }
  0x3b   :  { %68 = vsyncpa [#allocation6], 1 }
  0x3c   :  { %69 = vsyncpa [#allocation4], 1 }

</bundles_post_ra>
